<compile_context>
chip_gen: v7x
topology: tpu7x:2x2x1
jax: 0.10.0
libtpu: 0.0.40
codegen_flags: <defaults>
</compile_context>

<pallas_src>
import jax
import jax.numpy as jnp
from jax.experimental import pallas as pl
from jax.experimental.pallas import tpu as pltpu


def _matmul_bn_relu_kernel(w_ref, p_ref, o_ref):
    # w_ref: (O, K*K*C)   bf16  per-view flattened conv weights
    # p_ref: (K*K*C, BHW) bf16  per-view im2col patches (lane-dense last dim)
    # o_ref: (O, BHW)           per-view output (lane-dense store)

    # Single fused MXU matmul over the whole K*K*C contraction, f32 accumulate.
    acc = jnp.dot(w_ref[...], p_ref[...], preferred_element_type=jnp.float32)

    # Training-mode BatchNorm2d per output channel (row): batch statistics over
    # B*H*W, biased variance, eps=1e-5, gamma=1 / beta=0 (their init values).
    mean = jnp.mean(acc, axis=1, keepdims=True)
    centered = acc - mean
    var = jnp.mean(centered * centered, axis=1, keepdims=True)
    y = centered * jax.lax.rsqrt(var + 1e-5)

    # ReLU, lane-dense store.
    o_ref[...] = jnp.maximum(y, 0.0).astype(o_ref.dtype)


def stereo_conv_block(x, weight, bias=None, padding=1):
    """x: (B, C, 2, H, W); weight: (O, C, 2, K, K); bias: (2, O) or None.
    Returns (B, O, 2, H', W') matching the PyTorch StereoConvBlock forward
    (stride=1, training-mode BatchNorm).

    `bias` is accepted for API parity but intentionally NOT used: training-mode
    BatchNorm subtracts the per-channel batch mean, which cancels any
    per-channel additive bias exactly (verified against the reference below).
    """
    del bias  # cancelled exactly by the mean subtraction of training-mode BN

    B, C, two, H, W = x.shape
    assert two == 2
    O, C_w, _, K, K2 = weight.shape
    assert C_w == C and K2 == K

    # ---- JAX glue: layout plumbing only (transpose, circular pad, im2col) ----
    xv = jnp.transpose(x, (2, 1, 0, 3, 4))  # (2, C, B, H, W)
    if padding:
        xv = jnp.pad(
            xv,
            ((0, 0), (0, 0), (0, 0), (padding, padding), (padding, padding)),
            mode="wrap",  # == F.pad(mode='circular')
        )
    Ho = H + 2 * padding - (K - 1)
    Wo = W + 2 * padding - (K - 1)
    BHW = B * Ho * Wo
    KKC = K * K * C

    # im2col patches, row order (kh, kw, c) -> (2, K*K*C, B*Ho*Wo), lane-dense.
    taps = []
    for kh in range(K):
        for kw in range(K):
            taps.append(xv[:, :, :, kh:kh + Ho, kw:kw + Wo])  # (2, C, B, Ho, Wo)
    patch = jnp.stack(taps, axis=1).reshape(2, KKC, BHW)

    # weights flattened to match the patch row order: (2, O, K*K*C)
    w2 = jnp.transpose(weight, (2, 0, 3, 4, 1)).reshape(2, O, KKC)

    # bf16 operands, f32 MXU accumulation (no HIGHEST multi-pass decomposition).
    patch = patch.astype(jnp.bfloat16)
    w2 = w2.astype(jnp.bfloat16)

    out_itemsize = jnp.dtype(x.dtype).itemsize
    cost = pl.CostEstimate(
        flops=2 * 2 * O * KKC * BHW,          # 2 views x (2*M*K*N)
        transcendentals=2 * O,                # rsqrt per channel per view
        bytes_accessed=(patch.size * 2) + (w2.size * 2) + (2 * O * BHW * out_itemsize),
    )

    out = pl.pallas_call(
        _matmul_bn_relu_kernel,
        out_shape=jax.ShapeDtypeStruct((2, O, BHW), x.dtype),
        grid=(2,),  # one grid step per stereo view
        in_specs=[
            pl.BlockSpec((None, O, KKC), lambda v: (v, 0, 0)),
            pl.BlockSpec((None, KKC, BHW), lambda v: (v, 0, 0)),
        ],
        out_specs=pl.BlockSpec((None, O, BHW), lambda v: (v, 0, 0)),
        compiler_params=pltpu.CompilerParams(
            dimension_semantics=("parallel",),
            vmem_limit_bytes=32 * 1024 * 1024,
        ),
        cost_estimate=cost,
    )(w2, patch)

    # back to the PyTorch convention: (B, O, 2, H', W')
    out = out.reshape(2, O, B, Ho, Wo)
    return jnp.transpose(out, (2, 1, 0, 3, 4))


def _reference_forward(x, weight, bias, padding=1):
    """Pure-JAX reference reproducing the PyTorch module (training-mode BN),
    INCLUDING the conv bias (which BN cancels).  Conv inputs are rounded to
    bf16 with f32 accumulation to match the kernel's MXU precision so a tight
    tolerance can be used."""
    outs = []
    for v in range(2):
        xi = x[:, :, v]                                  # (B, C, H, W)
        xp = jnp.pad(xi, ((0, 0), (0, 0), (padding, padding), (padding, padding)),
                     mode="wrap")
        w = weight[:, :, v]                              # (O, C, K, K)
        o = jax.lax.conv_general_dilated(
            xp.astype(jnp.bfloat16), w.astype(jnp.bfloat16),
            window_strides=(1, 1), padding="VALID",
            dimension_numbers=("NCHW", "OIHW", "NCHW"),
            preferred_element_type=jnp.float32,
        )
        o = o + bias[v][None, :, None, None]
        mean = jnp.mean(o, axis=(0, 2, 3), keepdims=True)
        var = jnp.mean((o - mean) ** 2, axis=(0, 2, 3), keepdims=True)
        o = (o - mean) / jnp.sqrt(var + 1e-5)
        o = jnp.maximum(o, 0.0)
        outs.append(o)
    return jnp.stack(outs, axis=2).astype(x.dtype)       # (B, O, 2, H, W)


if __name__ == "__main__":
    B, C, O, H, W, K, P = 2, 4, 8, 16, 16, 3, 1

    key = jax.random.PRNGKey(0)
    kx, kw, kb = jax.random.split(key, 3)

    # input (B, C, 2, H, W)
    x = jax.random.normal(kx, (B, C, 2, H, W), dtype=jnp.float32)

    # StereoConv2d params: weight (O, C, 2, K, K) xavier_normal, bias (2, O)
    fan_in = C * 2 * K * K
    fan_out = O * 2 * K * K
    xavier_std = (2.0 / (fan_in + fan_out)) ** 0.5
    weight = xavier_std * jax.random.normal(kw, (O, C, 2, K, K), dtype=jnp.float32)
    bias = 0.1 * jax.random.normal(kb, (2, O), dtype=jnp.float32)

    out = stereo_conv_block(x, weight, bias, padding=P)
    out = jax.block_until_ready(out)

    ref = _reference_forward(x, weight, bias, padding=P)
    assert out.shape == (B, O, 2, H, W), out.shape
    max_err = float(jnp.max(jnp.abs(out - ref)))
    assert max_err < 1e-3, max_err

    print("KERNEL_OK")
</pallas_src>

<mosaic_0001>
module attributes {stable_mosaic.version = 11 : i64} {
  func.func @_matmul_bn_relu_kernel(%arg0: i32, %arg1: memref<1x8x36xbf16, #tpu.memory_space<vmem>>, %arg2: memref<1x36x512xbf16, #tpu.memory_space<vmem>>, %arg3: memref<1x8x512xf32, #tpu.memory_space<vmem>>) attributes {dimension_semantics = [#tpu.dimension_semantics<parallel>], iteration_bounds = array<i64: 2>, scalar_prefetch = 0 : i64, scratch_operands = 0 : i64, tpu.core_type = #tpu.core_type<tc>, window_params = [{transform_indices = @transform_0, window_bounds = array<i64: 1, 8, 36>}, {transform_indices = @transform_1, window_bounds = array<i64: 1, 36, 512>}, {transform_indices = @transform_2, window_bounds = array<i64: 1, 8, 512>}]} {
    %c0 = arith.constant 0 : index
    %c0_0 = arith.constant 0 : index
    %c0_1 = arith.constant 0 : index
    %0 = vector.load %arg1[%c0, %c0_0, %c0_1] : memref<1x8x36xbf16, #tpu.memory_space<vmem>>, vector<1x8x36xbf16>
    %1 = vector.shape_cast %0 : vector<1x8x36xbf16> to vector<8x36xbf16>
    %c0_2 = arith.constant 0 : index
    %c0_3 = arith.constant 0 : index
    %c0_4 = arith.constant 0 : index
    %2 = vector.load %arg2[%c0_2, %c0_3, %c0_4] : memref<1x36x512xbf16, #tpu.memory_space<vmem>>, vector<1x36x512xbf16>
    %3 = vector.shape_cast %2 : vector<1x36x512xbf16> to vector<36x512xbf16>
    %cst = arith.constant dense<0.000000e+00> : vector<8x512xf32>
    %4 = tpu.matmul %1, %3, %cst {dimension_numbers = #tpu.dot_dimension_numbers<[1], [0], [0], [1], [0, 0, 1, 1], [], []>} : vector<8x36xbf16>, vector<36x512xbf16>, vector<8x512xf32> -> vector<8x512xf32>
    %cst_5 = arith.constant dense<0.000000e+00> : vector<8xf32>
    %5 = vector.multi_reduction <add>, %4, %cst_5 [1] : vector<8x512xf32> to vector<8xf32>
    %6 = vector.shape_cast %5 : vector<8xf32> to vector<8x1xf32>
    %cst_6 = arith.constant 5.120000e+02 : f32
    %7 = vector.broadcast %cst_6 : f32 to vector<8x1xf32>
    %8 = arith.divf %6, %7 : vector<8x1xf32>
    %9 = vector.broadcast %8 : vector<8x1xf32> to vector<8x512xf32>
    %10 = arith.subf %4, %9 : vector<8x512xf32>
    %11 = arith.mulf %10, %10 : vector<8x512xf32>
    %cst_7 = arith.constant dense<0.000000e+00> : vector<8xf32>
    %12 = vector.multi_reduction <add>, %11, %cst_7 [1] : vector<8x512xf32> to vector<8xf32>
    %13 = vector.shape_cast %12 : vector<8xf32> to vector<8x1xf32>
    %cst_8 = arith.constant 5.120000e+02 : f32
    %14 = vector.broadcast %cst_8 : f32 to vector<8x1xf32>
    %15 = arith.divf %13, %14 : vector<8x1xf32>
    %cst_9 = arith.constant 9.99999974E-6 : f32
    %16 = vector.broadcast %cst_9 : f32 to vector<8x1xf32>
    %17 = arith.addf %15, %16 : vector<8x1xf32>
    %18 = math.rsqrt %17 : vector<8x1xf32>
    %19 = vector.broadcast %18 : vector<8x1xf32> to vector<8x512xf32>
    %20 = arith.mulf %10, %19 : vector<8x512xf32>
    %cst_10 = arith.constant 0.000000e+00 : f32
    %21 = vector.broadcast %cst_10 : f32 to vector<8x512xf32>
    %22 = arith.maximumf %20, %21 : vector<8x512xf32>
    %c0_11 = arith.constant 0 : index
    %c0_12 = arith.constant 0 : index
    %c0_13 = arith.constant 0 : index
    %23 = vector.load %arg3[%c0_11, %c0_12, %c0_13] : memref<1x8x512xf32, #tpu.memory_space<vmem>>, vector<1x8x512xf32>
    %24 = vector.shape_cast %23 : vector<1x8x512xf32> to vector<8x512xf32>
    %25 = vector.shape_cast %22 : vector<8x512xf32> to vector<1x8x512xf32>
    tpu.vector_store %arg3[%c0_11, %c0_12, %c0_13], %25 {strides = array<i32>} : memref<1x8x512xf32, #tpu.memory_space<vmem>>, vector<1x8x512xf32>,
    return
  }
  func.func @transform_0(%arg0: i32) -> (i32, i32, i32) {
    %c0_i32 = arith.constant 0 : i32
    %c0_i32_0 = arith.constant 0 : i32
    %c0_i32_1 = arith.constant 0 : i32
    return %arg0, %c0_i32, %c0_i32_0 : i32, i32, i32
  }
  func.func @transform_1(%arg0: i32) -> (i32, i32, i32) {
    %c0_i32 = arith.constant 0 : i32
    %c0_i32_0 = arith.constant 0 : i32
    %c0_i32_1 = arith.constant 0 : i32
    return %arg0, %c0_i32, %c0_i32_0 : i32, i32, i32
  }
  func.func @transform_2(%arg0: i32) -> (i32, i32, i32) {
    %c0_i32 = arith.constant 0 : i32
    %c0_i32_0 = arith.constant 0 : i32
    %c0_i32_1 = arith.constant 0 : i32
    return %arg0, %c0_i32, %c0_i32_0 : i32, i32, i32
  }
}

</mosaic_0001>

<bundles_post_ra>
// kernel: tpu_custom_call.1
= control target key start
LH: loop header
LB: loop body
LE: loop exit
PB: predicated region body
PF: predicated region fallthrough
CT: control target
= control target key end

     0   :  { %7 = vsyncpa [#allocation3], 0  ;;  %s721_s0 = inlined_call_operand.vmem [shape: bf16[2,8,36], index: 0, kind: input, shape index: {}]   ;;  %s722_s1 = inlined_call_operand.vmem [shape: bf16[2,36,512], index: 1, kind: input, shape index: {}]   ;;  %s723_s2 = inlined_call_operand.hbm [shape: f32[2,8,512], index: 2, kind: output, shape index: {}]  }
   0x1   :  { %9 = vsyncpa [#allocation3 + $0x1], 0  ;;  %s610_s9 = smov 0   ;;  %s612_s10 = smov 0  }
   0x2   :  { %s614_s11 = smov 0   ;;  %s616_s12 = smov 0  }
   0x3 LB: > { %s631_s13 = sadd.s32 4294967295, %s591_s12   ;;  %s441_s14 = sadd.s32 4294967294, %s591_s12   ;;  %s591_s12 = sphi %s616_s12, %s729_s12   ;;  %s587_s11 = sphi %s614_s11, %s728_s11   ;;  %s583_s10 = sphi %s612_s10, %s727_s10   ;;  %s579_s9 = sphi %s610_s9, %s726_s9  }
   0x4   : > { %s635_s15 = sadd.s32 1, %s591_s12   ;;  %s74_s16 = sadd.s32 1, %s587_s11 }
   0x5   : > { %s71_s17 = ssub.s32 %s591_s12, %s635_s15  ;;  %p84_p0 = scmp.ne.s32.totalorder %s587_s11, %s583_s10 }
   0x6   : > { %p72_p1 = scmp.eq.s32.totalorder %s71_s17, 0  ;;  %p85_p2 = scmp.eq.s32.totalorder %s631_s13, 1 }
   0x7   : > { %p90_p3 = scmp.ne.s32.totalorder %s583_s10, %s579_s9  ;;  %p91_p4 = scmp.eq.s32.totalorder %s441_s14, 1 }
   0x8   : > { %s646_s18 = scalar_select %p72_p1, %s587_s11, %s74_s16  }
   0x9   : > { %p648_p5 = por %p85_p2, %p84_p0  ;;  %p652_p6 = por %p91_p4, %p90_p3 }
   0xa   : > { %p444_p7 = scmp.ge.s32.totalorder %s591_s12, 1  ;;  %p124_p8 = scmp.lt.s32.totalorder %s591_s12, 3 }
   0xc   : > { %p125_p9 = pnand %p444_p7, %p124_p8 }
   0xd   : > { %p150_p10 = scmp.lt.s32.totalorder (!%p125_p9), %s631_s13, 1  ;;  %v593_v0 = vmov (!%p125_p9), 0   ;;  %vm225_vm0 = vcmask (!%p125_p9), 1041408   ;;  %vm221_vm1 = vcmask (!%p125_p9), 293888   ;;  %s147_s30 = sand.u32 (!%p125_p9), 1, %s583_s10  }
   0xe   : > { %128 = sbr.rel (%p125_p9) target bundleno = 588 (0x24c), region = 28  ;;  %270 = vmatprep.mubr.bf16.mxu0 (!%p125_p9), %v593_v0  ;;  %311 = vmatprep.mubr.bf16.mxu1 (!%p125_p9), %v593_v0  ;;  %s445_s3 = sshll.u32 (!%p125_p9), %s147_s30, 5 }
   0xf   : > { %s469_s4 = sshll.u32 (!%p125_p9), %s631_s13, 9  ;;  %s149_s5 = scalar_lea.vmem (!%p125_p9), [#allocation2], %s445_s3 }
  0x10   : > { %s370_s6 = sshll.u32 (!%p125_p9), %s149_s5, 4  ;;  %s679_s14 = scalar_lea.hbm (!%p125_p9), %s723_s2, %s469_s4  ;;  %s681_s6 = int_to_ptr.vmem [resolvable:$true] %s370_s6 }
  0x11   : > { %s529_s16 = scalar_lea.vmem (!%p125_p9), %s681_s6, 512  ;;  %s594_s17 = smov (!%p125_p9), [#allocation2]  }
  0x12   : > { %p530_p11 = scmp.ne.s32.totalorder (!%p125_p9), %s681_s6, %s529_s16 }
  0x14   : > { %p531_p12 = pnand (!%p125_p9), %p530_p11, %p648_p5 }
  0x15   : > { %s660_s21 = scalar_select %p150_p10, %s631_s13, 1 }
  0x16   : > { %s356_s13 = scalar_lea.sflag [#allocation3], %s147_s30  ;;  %p532_p13 = pneg %p531_p12 }
  0x17   : > { %s470_s22 = smul.u32 80, %s660_s21  ;;  %s446_s26 = sshll.u32 %s660_s21, 2 }
  0x18   : > { %s153_s29 = scalar_lea.vmem %s721_s0, %s446_s26  ;;  %s533_s21 = sshll.u32 %s594_s17, 4  ;;  %s534_s21 = int_to_ptr.vmem [resolvable:$false] %s533_s21 }
  0x19   : > { %s158_s25 = scalar_lea.vmem %s722_s1, %s470_s22  ;;  %v160_v17 = vld [vmem:[%s153_s29] sm:$0xf]  ;;  %s535_s22 = scalar_lea.vmem %s534_s21, 1024 }
  0x1a   : > { %v511_v1 = vld [vmem:[%s158_s25 + $0x4] ss:$16 sps:$4 sm:$0xff]   ;;  %v513_v2 = vld [vmem:[%s158_s25 + $0xc] ss:$16 sps:$4 sm:$0xff]   ;;  %v515_v3 = vld [vmem:[%s158_s25] ss:$16 sps:$4 sm:$0xff]   ;;  %p536_p0 = scmp.lt.s32.totalorder %s681_s6, %s534_s21  ;;  %p537_p1 = scmp.lt.s32.totalorder %s535_s22, %s529_s16 }
  0x1b   : > { %238 = vmatprep.subr.bf16.mxu0 %v511_v1  ;;  %v516_v4 = vld [vmem:[%s158_s25 + $0x8] ss:$16 sps:$4 sm:$0xff]   ;;  %279 = vmatprep.subr.bf16.mxu1 %v513_v2  ;;  %v517_v5 = vld [vmem:[%s158_s25 + $0x24] ss:$16 sps:$4 sm:$0xff]   ;;  %v519_v6 = vld [vmem:[%s158_s25 + $0x2c] ss:$16 sps:$4 sm:$0xff]  }
  0x1c   : > { %239 = vmatpush1.bf16.msra.mxu0 %v515_v3  ;;  %280 = vmatpush1.bf16.msra.mxu1 %v516_v4  ;;  %v521_v7 = vld [vmem:[%s158_s25 + $0x20] ss:$16 sps:$4 sm:$0xff]   ;;  %v522_v8 = vld [vmem:[%s158_s25 + $0x28] ss:$16 sps:$4 sm:$0xff]   ;;  %p538_p2 = por %p537_p1, %p536_p0 }
  0x1d   : > { %240 = vmatprep.subr.bf16.mxu0 %v517_v5  ;;  %v169_v9 = vld [vmem:[%s158_s25 + $0x40] sm:$0x33]  ;;  %v170_v10 = vld [vmem:[%s158_s25 + $0x48] sm:$0x33]  ;;  %281 = vmatprep.subr.bf16.mxu1 %v519_v6 }
  0x1e   : > { %v457_v11 = vcombine.high %v169_v9, %v169_v9  ;;  %v459_v12 = vcombine.high %v170_v10, %v170_v10  ;;  %v456_v13 = vcombine.low %v169_v9, %v169_v9  ;;  %v458_v14 = vcombine.low %v170_v10, %v170_v10  ;;  %p539_p3 = pnand %p538_p2, %p532_p13 }
  0x20   : > { %241 = vmatpush1.bf16.msra.mxu0 %v521_v7  ;;  %282 = vmatpush1.bf16.msra.mxu1 %v522_v8  ;;  %v227_v15 = vsel %vm225_vm0, %v456_v13, 0  ;;  %v233_v16 = vsel %vm225_vm0, %v458_v14, 0 }
  0x21   : > { %460 = vmatprep.subr.msk.bf16.mxu0 %vm225_vm0, %v457_v11  ;;  %462 = vmatprep.subr.msk.bf16.mxu1 %vm225_vm0, %v459_v12 }
  0x24   : > { %243 = vmatpush1.bf16.msra.mxu0 %v227_v15  ;;  %284 = vmatpush1.bf16.msra.mxu1 %v233_v16 }
  0x27   : > { %461 = vmatmul.mubr.msk.bf16.vlgmr.msra.gmra.mrb[0].mxu0 %vm221_vm1, %v160_v17  ;;  %463 = vmatmul.mubr.msk.bf16.vlgmr.msra.gmra.mrb[0].mxu1 %vm221_vm1, %v160_v17 }
  0xfa   : > { %v272_v18 = vpop.f32.mrb[0].mxu0  ;;  %v313_v19 = vpop.f32.mrb[0].mxu1 }
  0xfb   : > { %v274_v20 = vpop.f32.mrb[1].mxu0  ;;  %v315_v21 = vpop.f32.mrb[1].mxu1 }
  0xfc   : > { %v320_v22 = vadd.f32 %v274_v20, %v272_v18  ;;  %v276_v23 = vpop.f32.mrb[2].mxu0  ;;  %v317_v24 = vpop.f32.mrb[2].mxu1 }
  0xfd   : > { %v277_v25 = vpop.f32.mrb[3].mxu0  ;;  %v318_v26 = vpop.f32.mrb[3].mxu1 }
  0xfe   : > { %v321_v27 = vadd.f32 %v320_v22, %v313_v19 }
 0x100   : > { %v322_v28 = vadd.f32 %v321_v27, %v315_v21 }
 0x102   : > { %323 = vadd.xlane.f32.xlu0 %v322_v28 }
 0x18f   : > { %v324_v29 = vpop.xlane.xlu0 %323 }
 0x190   : > { %v326_v30 = vmul.f32 0.001953125, %v324_v29 }
 0x192   : > { %v327_v31 = vsub.f32 %v272_v18, %v326_v30  ;;  %v328_v32 = vsub.f32 %v274_v20, %v326_v30  ;;  %v329_v33 = vsub.f32 %v313_v19, %v326_v30  ;;  %v330_v34 = vsub.f32 %v315_v21, %v326_v30 }
 0x194   : > { %v331_v35 = vmul.f32 %v327_v31, %v327_v31  ;;  %v332_v36 = vmul.f32 %v328_v32, %v328_v32  ;;  %v333_v37 = vmul.f32 %v329_v33, %v329_v33  ;;  %v334_v39 = vmul.f32 %v330_v34, %v330_v34 }
 0x196   : > { %v335_v38 = vadd.f32 %v332_v36, %v331_v35 }
 0x198   : > { %v336_v40 = vadd.f32 %v335_v38, %v333_v37 }
 0x19a   : > { %v337_v41 = vadd.f32 %v336_v40, %v334_v39 }
 0x19c   : > { %338 = vadd.xlane.f32.xlu0 %v337_v41 }
 0x229   : > { %v339_v42 = vpop.xlane.xlu0 %338 }
 0x22a   : > { %v340_v43 = vmul.f32 0.001953125, %v339_v42 }
 0x22c   : > { %v341_v44 = vadd.f32 1e-05, %v340_v43 }
 0x22e   : > { %527 = vrsqrt.f32 %v341_v44 }
 0x238   : > { %v528_v45 = vpop.eup %527 }
 0x239   : > { %v343_v46 = vmul.f32 %v528_v45, %v327_v31  ;;  %v344_v47 = vmul.f32 %v528_v45, %v328_v32  ;;  %v345_v48 = vmul.f32 %v528_v45, %v329_v33  ;;  %v346_v49 = vmul.f32 %v528_v45, %v330_v34 }
 0x23b   : > { %v347_v50 = vmax.f32 %v343_v46, 0.0  ;;  %v348_v51 = vmax.f32 %v344_v47, 0.0  ;;  %v349_v52 = vmax.f32 %v345_v48, 0.0  ;;  %v350_v53 = vmax.f32 %v346_v49, 0.0 }
 0x23d   : > { %351 = vst [vmem:[%s149_s5] sm:$0xff] %v347_v50  ;;  %352 = vst [vmem:[%s149_s5 + $0x8] sm:$0xff] %v348_v51 }
 0x23e   : > { %353 = vst [vmem:[%s149_s5 + $0x10] sm:$0xff] %v349_v52  ;;  %354 = vst [vmem:[%s149_s5 + $0x18] sm:$0xff] %v350_v53 }
 0x23f   : > { %542 = shalt.err (!%p539_p3)
}
 0x240   : > { %s543_s23 = scalar_lea.hbm %s679_s14, 512  ;;  %s547_s26 = scalar_lea.hbm %s723_s2, 1024 }
 0x241   : > { %p544_p4 = scmp.ne.s32.totalorder %s679_s14, %s543_s23  ;;  %p548_p9 = scmp.lt.u32.totalorder %s679_s14, %s723_s2 }
 0x242   : > { %p549_p10 = scmp.lt.u32.totalorder %s547_s26, %s543_s23  ;;  %p551_p12 = scmp.lt.u32.totalorder %s543_s23, %s679_s14 }
 0x243   : > { %p545_p7 = pnand %p544_p4, %p648_p5 }
 0x244   : > { %p550_p11 = por %p549_p10, %p548_p9 }
 0x245   : > { %p546_p8 = pneg %p545_p7 }
 0x246   : > { %p552_p13 = por %p551_p12, %p550_p11 }
 0x248   : > { %p553_p0 = pnand %p552_p13, %p546_p8 }
 0x24a   : > { %556 = shalt.err (!%p553_p0)
}
 0x24b   : > { %471 = dma.vmem_to_hbm [thread:$0]  (%p648_p5), %s681_s6, 512, %s679_s14, %s356_s13  }
 0x24c PF: > { %p477_p1 = scmp.ge.s32.totalorder %s591_s12, 2  ;;  %s382_s29 = sand.u32 1, %s579_s9  }
 0x24d   : > { %s383_s30 = scalar_lea.sflag [#allocation3], %s382_s29 }
 0x24e   : > { %p474_p2 = pnand %p477_p1, %p652_p6 }
 0x250   : > { %574 = dma.done.wait (!%p474_p2), %s383_s30, 512  }
 0x251   : > { %576 = vsyncadd (!%p474_p2), %s383_s30, 4294966784  ;;  %p12_p3 = scmp.ge.s32.totalorder %s635_s15, 4   ;;  %s726_s9 = smov %s583_s10 }
 0x252   : > { %s727_s10 = smov %s587_s11  ;;  %s728_s11 = smov %s646_s18 }
 0x253   : > { %s729_s12 = smov %s635_s15  ;;  %14 = sbr.rel (!%p12_p3) target bundleno = 3 (0x3), region = 66 }
 0x25a   :  { %388 = vsyncpa [#allocation3], 1 }
 0x25b   :  { %390 = vsyncpa [#allocation3 + $0x1], 1 }

</bundles_post_ra>
